<compile_context>
chip_gen: v7x
topology: tpu7x:2x2x1
jax: 0.10.0
libtpu: 0.0.40
codegen_flags: <defaults>
</compile_context>

<pallas_src>
import functools

import jax
import jax.numpy as jnp
from jax.experimental import pallas as pl
from jax.experimental.pallas import tpu as pltpu


def _round_up(x, m):
    return (x + m - 1) // m * m


def _wrap_i32(v):
    """Wrap an arbitrary Python int to signed 32-bit (two's complement)."""
    v &= 0xFFFFFFFF
    return v - (1 << 32) if v >= (1 << 31) else v


def _hash32(idx, seed):
    """Counter-based uniform 32-bit hash (fmix32-style) on int32 lanes. Pure VPU ops."""
    x = idx + jnp.int32(_wrap_i32(seed * 0x9E3779B1 + 0x7F4A7C15))
    x = x ^ jax.lax.shift_right_logical(x, 16)
    x = x * jnp.int32(_wrap_i32(0x85EBCA6B))
    x = x ^ jax.lax.shift_right_logical(x, 13)
    x = x * jnp.int32(_wrap_i32(0xC2B2AE35))
    x = x ^ jax.lax.shift_right_logical(x, 16)
    return x


def _dropout_rows(rows, row_start, *, dropout_p, seed):
    """Inverted dropout on an (R, D) f32 block; mask keyed on the global element index."""
    r, d = rows.shape
    rix = jax.lax.broadcasted_iota(jnp.int32, (r, d), 0) + row_start
    cix = jax.lax.broadcasted_iota(jnp.int32, (r, d), 1)
    idx = rix * jnp.int32(d) + cix
    bits = _hash32(idx, seed)
    # bits uniform over [-2^31, 2^31): signed compare against p*2^32 - 2^31 keeps w.p. 1-p.
    thresh = int(round(dropout_p * 2.0 ** 32)) - 2 ** 31
    thresh = max(min(thresh, 2 ** 31 - 1), -(2 ** 31))
    keep = bits >= jnp.int32(thresh)
    return jnp.where(keep, rows, 0.0) * (1.0 / (1.0 - dropout_p))


def _embed_onehot_kernel(ids_ref, table_ref, out_ref, *, vocab, tm, dropout_p, training, seed):
    """Small-vocab path: gather TM rows at once via an exact one-hot (TM,V)x(V,D) matmul."""
    ids = ids_ref[...]                                                    # (TM, 1) int32
    onehot = (ids == jax.lax.broadcasted_iota(jnp.int32, (tm, vocab), 1)).astype(table_ref.dtype)
    rows = jnp.dot(onehot, table_ref[...],
                   preferred_element_type=jnp.float32,
                   precision=jax.lax.Precision.HIGHEST)                   # exact lookup
    if training and 0.0 < dropout_p < 1.0:
        rows = _dropout_rows(rows, pl.program_id(0) * tm, dropout_p=dropout_p, seed=seed)
    elif training and dropout_p >= 1.0:
        rows = jnp.zeros_like(rows)
    out_ref[...] = rows.astype(out_ref.dtype)


def _embed_gather_kernel(ids_ref, table_ref, out_ref, *, tm, dropout_p, training, seed):
    """General path: SMEM ids drive an 8-row-group gather out of the VMEM-resident table.

    Per group: 8 dynamic (1, D) row loads -> dense (8, D) value -> fused dropout ->
    ONE unmasked sublane-group store. No per-row masked stores, no output read-back.
    """
    groups = tm // 8
    block_row0 = pl.program_id(0) * tm

    def group_body(g, carry):
        start = pl.multiple_of(g * 8, 8)
        rows = jnp.concatenate(
            [table_ref[pl.ds(ids_ref[start + r], 1), :] for r in range(8)], axis=0
        ).astype(jnp.float32)                                             # (8, D)
        if training and 0.0 < dropout_p < 1.0:
            rows = _dropout_rows(rows, block_row0 + start, dropout_p=dropout_p, seed=seed)
        elif training and dropout_p >= 1.0:
            rows = jnp.zeros_like(rows)
        out_ref[pl.ds(start, 8), :] = rows.astype(out_ref.dtype)          # dense store
        return carry

    unroll = True if groups <= 8 else 8
    jax.lax.fori_loop(0, groups, group_body, 0, unroll=unroll)


def fast_embedding_forward(x, emb_table, *, dropout_p=0.5, training=False, seed=0,
                           block_tokens=None, onehot_vocab_limit=512):
    """Pallas forward of Fast_Embedding: embedding lookup + (inverted) dropout.

    x         : (B, S) int32 token ids in [0, ntoken]   (ntoken == padding idx)
    emb_table : (ntoken + 1, emb_dim)                    (row ntoken is zeros)
    returns   : (B, S, emb_dim) in emb_table.dtype
    """
    B, S = x.shape
    V, D = emb_table.shape
    n = B * S
    itemsize = emb_table.dtype.itemsize
    use_onehot = V <= onehot_vocab_limit

    # Token tile: multiple of 8 sublanes (f32) -> dense vst, amortized grid overhead.
    if block_tokens is None:
        if use_onehot:
            block_tokens = max(8, min(256, (512 << 10) // max(V * 4, 1)))   # onehot <= 512 KiB
        else:
            block_tokens = max(8, min(2048, (1 << 20) // max(D * itemsize, 1)))  # ~1 MiB out block
    tm = min(int(block_tokens), _round_up(n, 8))
    tm = max(8, _round_up(tm, 8))
    n_pad = _round_up(n, tm)
    num_blocks = n_pad // tm

    pad_id = V - 1                        # padding_idx == ntoken; that row is zero
    ids = jnp.full((n_pad,), pad_id, dtype=jnp.int32)
    ids = ids.at[:n].set(x.reshape(-1).astype(jnp.int32))

    # VMEM budget: double-buffered resident table + double-buffered (TM, D) output
    # (+ one-hot staging on the small-vocab path) + headroom.
    # TODO(synk): for tables whose double-buffered footprint exceeds ~48 MiB (v7x has
    # 64 MiB VMEM per TensorCore), switch to a DMA-gather fallback with the table left
    # in HBM (memory_space=pl.ANY) instead of keeping it VMEM-resident.
    table_bytes = V * D * itemsize
    out_block_bytes = tm * D * itemsize
    onehot_bytes = tm * V * 4 if use_onehot else 0
    est_bytes = (2 * table_bytes + 2 * out_block_bytes + 2 * onehot_bytes
                 + 2 * tm * 4 + (2 << 20))
    vmem_limit = int(min(est_bytes, 56 << 20)) if est_bytes > (16 << 20) else None
    compiler_params = pltpu.CompilerParams(
        dimension_semantics=("parallel",),   # tokens independent -> v7x megacore sharding
        vmem_limit_bytes=vmem_limit,
    )

    if use_onehot:
        kernel = functools.partial(
            _embed_onehot_kernel, vocab=V, tm=tm, dropout_p=float(dropout_p),
            training=bool(training), seed=int(seed))
        out_flat = pl.pallas_call(
            kernel,
            out_shape=jax.ShapeDtypeStruct((n_pad, D), emb_table.dtype),
            grid=(num_blocks,),
            in_specs=[
                pl.BlockSpec((tm, 1), lambda i: (i, 0)),   # TM token ids per step
                pl.BlockSpec((V, D), lambda i: (0, 0)),    # resident embedding table
            ],
            out_specs=pl.BlockSpec((tm, D), lambda i: (i, 0)),
            compiler_params=compiler_params,
        )(ids.reshape(n_pad, 1), emb_table)
    else:
        kernel = functools.partial(
            _embed_gather_kernel, tm=tm, dropout_p=float(dropout_p),
            training=bool(training), seed=int(seed))
        out_flat = pl.pallas_call(
            kernel,
            out_shape=jax.ShapeDtypeStruct((n_pad, D), emb_table.dtype),
            grid=(num_blocks,),
            in_specs=[
                # Per-block id tile in SMEM (no whole-sequence scalar prefetch).
                pl.BlockSpec((tm,), lambda i: (i,), memory_space=pltpu.MemorySpace.SMEM),
                pl.BlockSpec((V, D), lambda i: (0, 0)),    # resident embedding table
            ],
            out_specs=pl.BlockSpec((tm, D), lambda i: (i, 0)),
            compiler_params=compiler_params,
        )(ids, emb_table)

    return out_flat[:n].reshape(B, S, D)


def make_params(ntoken, emb_dim, key):
    """Deterministic synthetic embedding table; padding row (index ntoken) = 0."""
    w = jax.random.normal(key, (ntoken + 1, emb_dim), dtype=jnp.float32)
    w = w.at[ntoken].set(0.0)            # padding_idx=ntoken
    return w


if __name__ == "__main__":
    ntoken = 32
    emb_dim = 128
    B, S = 2, 8
    dropout_p = 0.5

    key = jax.random.PRNGKey(0)
    k_emb, k_ids = jax.random.split(key)

    emb_table = make_params(ntoken, emb_dim, k_emb)
    x = jax.random.randint(k_ids, (B, S), 0, ntoken + 1, dtype=jnp.int32)

    ref = jnp.take(emb_table, x, axis=0)

    # 1) Eval mode (dropout is identity), small-vocab one-hot path (exact w/ HIGHEST).
    out = fast_embedding_forward(x, emb_table, dropout_p=dropout_p, training=False)
    out = jax.block_until_ready(out)
    assert out.shape == (B, S, emb_dim)
    assert jnp.allclose(out, ref, atol=1e-5), "one-hot path mismatch vs reference"

    # 2) Eval mode, general row-gather path (forced by disabling the one-hot path).
    out_g = fast_embedding_forward(x, emb_table, dropout_p=dropout_p, training=False,
                                   onehot_vocab_limit=0)
    out_g = jax.block_until_ready(out_g)
    assert jnp.allclose(out_g, ref, atol=1e-6), "gather path mismatch vs reference"

    # 3) Training mode (inverted dropout): every element is either 0 or ref / (1 - p).
    scale = 1.0 / (1.0 - dropout_p)
    out_tr = fast_embedding_forward(x, emb_table, dropout_p=dropout_p, training=True, seed=123)
    out_tr = jax.block_until_ready(out_tr)
    ok = jnp.isclose(out_tr, 0.0, atol=1e-6) | jnp.isclose(out_tr, ref * scale, atol=1e-3)
    assert bool(jnp.all(ok)), "training-mode dropout values not in {0, ref/(1-p)} (one-hot path)"
    zero_frac = float(jnp.mean((out_tr == 0.0).astype(jnp.float32)))
    assert 0.3 < zero_frac < 0.9, f"dropout zero fraction implausible: {zero_frac}"

    out_tr_g = fast_embedding_forward(x, emb_table, dropout_p=dropout_p, training=True,
                                      seed=123, onehot_vocab_limit=0)
    out_tr_g = jax.block_until_ready(out_tr_g)
    ok_g = jnp.isclose(out_tr_g, 0.0, atol=1e-6) | jnp.isclose(out_tr_g, ref * scale, atol=1e-3)
    assert bool(jnp.all(ok_g)), "training-mode dropout values not in {0, ref/(1-p)} (gather path)"

    print("KERNEL_OK")
</pallas_src>

<mosaic_0001>
module attributes {stable_mosaic.version = 11 : i64} {
  func.func @_embed_onehot_kernel(%arg0: i32, %arg1: memref<16x1xi32, #tpu.memory_space<vmem>>, %arg2: memref<33x128xf32, #tpu.memory_space<vmem>>, %arg3: memref<16x128xf32, #tpu.memory_space<vmem>>) attributes {dimension_semantics = [#tpu.dimension_semantics<parallel>], iteration_bounds = array<i64: 1>, scalar_prefetch = 0 : i64, scratch_operands = 0 : i64, tpu.core_type = #tpu.core_type<tc>, window_params = [{transform_indices = @transform_0, window_bounds = array<i64: 16, 1>}, {pipeline_mode = #tpu.pipeline_mode<synchronous>, transform_indices = @transform_1, window_bounds = array<i64: 33, 128>}, {transform_indices = @transform_2, window_bounds = array<i64: 16, 128>}]} {
    %c0 = arith.constant 0 : index
    %c0_0 = arith.constant 0 : index
    %0 = vector.load %arg1[%c0, %c0_0] : memref<16x1xi32, #tpu.memory_space<vmem>>, vector<16x1xi32>
    %1 = tpu.iota {dimensions = array<i32: 1>} : vector<16x33xi32>
    %2 = vector.broadcast %0 : vector<16x1xi32> to vector<16x33xi32>
    %3 = arith.cmpi eq, %2, %1 : vector<16x33xi32>
    %4 = arith.extui %3 : vector<16x33xi1> to vector<16x33xi32>
    %5 = arith.sitofp %4 : vector<16x33xi32> to vector<16x33xf32>
    %c0_1 = arith.constant 0 : index
    %c0_2 = arith.constant 0 : index
    %6 = vector.load %arg2[%c0_1, %c0_2] : memref<33x128xf32, #tpu.memory_space<vmem>>, vector<33x128xf32>
    %cst = arith.constant dense<0.000000e+00> : vector<16x128xf32>
    %7 = tpu.matmul %5, %6, %cst {dimension_numbers = #tpu.dot_dimension_numbers<[1], [0], [0], [1], [0, 0, 1, 1], [], []>, precision = #tpu.contract_precision<fp32>} : vector<16x33xf32>, vector<33x128xf32>, vector<16x128xf32> -> vector<16x128xf32>
    %c0_3 = arith.constant 0 : index
    %c0_4 = arith.constant 0 : index
    %8 = vector.load %arg3[%c0_3, %c0_4] : memref<16x128xf32, #tpu.memory_space<vmem>>, vector<16x128xf32>
    tpu.vector_store %arg3[%c0_3, %c0_4], %7 {strides = array<i32>} : memref<16x128xf32, #tpu.memory_space<vmem>>, vector<16x128xf32>,
    return
  }
  func.func @transform_0(%arg0: i32) -> (i32, i32) {
    %c0_i32 = arith.constant 0 : i32
    %c0_i32_0 = arith.constant 0 : i32
    return %arg0, %c0_i32 : i32, i32
  }
  func.func @transform_1(%arg0: i32) -> (i32, i32) {
    %c0_i32 = arith.constant 0 : i32
    %c0_i32_0 = arith.constant 0 : i32
    %c0_i32_1 = arith.constant 0 : i32
    return %c0_i32, %c0_i32_0 : i32, i32
  }
  func.func @transform_2(%arg0: i32) -> (i32, i32) {
    %c0_i32 = arith.constant 0 : i32
    %c0_i32_0 = arith.constant 0 : i32
    return %arg0, %c0_i32 : i32, i32
  }
}

</mosaic_0001>

<bundles_post_ra>
// kernel: tpu_custom_call.1
= control target key start
LH: loop header
LB: loop body
LE: loop exit
PB: predicated region body
PF: predicated region fallthrough
CT: control target
= control target key end

     0   :  { %7 = vsyncpa [#allocation3], 0  ;;  %s949_s0 = inlined_call_operand.vmem [shape: s32[16,1], index: 0, kind: input, shape index: {}]   ;;  %s950_s1 = inlined_call_operand.hbm [shape: f32[33,128], index: 1, kind: input, shape index: {}]   ;;  %s951_s2 = inlined_call_operand.hbm [shape: f32[16,128], index: 2, kind: output, shape index: {}]  }
   0x1   :  { %8 = vsyncpa [#allocation4], 0  ;;  %s859_s9 = smov [#allocation2]   ;;  %s811_s13 = scalar_lea.hbm %s950_s1, 640 }
   0x2   :  { %s16_s10 = sshll.u32 %s859_s9, 4  ;;  %p812_p0 = scmp.ne.s32.totalorder %s950_s1, %s811_s13  ;;  %s17_s10 = int_to_ptr.vmem [resolvable:$true] %s16_s10 }
   0x3   :  { %p815_p1 = scmp.lt.u32.totalorder %s811_s13, %s950_s1 }
   0x5   :  { %p817_p2 = pnand %p815_p1, %p812_p0 }
   0x7   :  { %820 = shalt.err (!%p817_p2)
}
   0x8   :  { %s821_s18 = scalar_lea.vmem %s17_s10, 640  ;;  %p826_p4 = scmp.lt.s32.totalorder %s17_s10, %s17_s10 }
   0x9   :  { %p822_p3 = scmp.ne.s32.totalorder %s17_s10, %s821_s18  ;;  %p827_p5 = scmp.lt.s32.totalorder %s821_s18, %s821_s18 }
   0xb   :  { %p828_p6 = por %p827_p5, %p826_p4 }
   0xd   :  { %p829_p7 = pnand %p828_p6, %p822_p3 }
   0xf   :  { %832 = shalt.err (!%p829_p7)
}
  0x10   :  { %s860_s19 = smov 128   ;;  %s861_s20 = smov 8  }
  0x11   :  { %22 = dma.hbm_to_vmem [thread:$0]  %s950_s1, 640, %s17_s10, [#allocation3], %s860_s19, %s860_s19, %s861_s20  }
  0x12   :  { %855 = dma.done.wait [#allocation3], 640  }
  0x13   :  { %856 = vsyncadd [#allocation3], 4294966656  ;;  %v862_v0 = vmov 0   ;;  %v26_v1 = vld [vmem:[%s949_s0] sm:$0xff]  ;;  %v43_v3 = vld [vmem:[#allocation2 + $0x8] sm:$0xff]  ;;  %vm54_vm0 = vcmask 1040384   ;;  %v28_v38 = vlaneseq }
  0x14   :  { %810 = vset.pattern.permute.xlu0 %v862_v0  ;;  %v42_v2 = vld [vmem:[#allocation2] sm:$0xff]  ;;  %v44_v5 = vld [vmem:[#allocation2 + $0x10] sm:$0xff]  ;;  %v45_v6 = vld [vmem:[#allocation2 + $0x18] sm:$0xff]  ;;  %v62_v8 = vand.u32 4294901760, %v43_v3  ;;  %vm47_vm1 = vcmask 269312   ;;  %v863_v41 = vmov 0.0  }
  0x15   :  { %31 = vperm.xlu0 %810, %v26_v1   ;;  %v59_v4 = vand.u32 4294901760, %v42_v2  ;;  %v27_v7 = vld [vmem:[%s949_s0 + $0x8] sm:$0xff]  ;;  %v65_v9 = vand.u32 4294901760, %v44_v5  ;;  %v68_v10 = vand.u32 4294901760, %v45_v6  ;;  %v46_v13 = vld [vmem:[#allocation2 + $0x20] sm:$0x1] }
  0x16   :  { %v157_v15 = vsub.f32 %v43_v3, %v62_v8  ;;  %v56_v16 = vsel %vm54_vm0, %v46_v13, 0  ;;  %v29_v39 = vand.u32 127, %v28_v38  ;;  %s864_s0 = smov [#allocation5]  }
  0x17   :  { %v901_v11 = vpack.c.bf16 %v62_v8, %v59_v4  ;;  %v903_v12 = vpack.c.bf16 %v68_v10, %v65_v9  ;;  %v150_v14 = vsub.f32 %v42_v2, %v59_v4  ;;  %v911_v19 = vand.u32 4294901760, %v56_v16  ;;  %s606_s1 = sshll.u32 %s864_s0, 4  ;;  %s607_s1 = int_to_ptr.vmem [resolvable:$true] %s606_s1 }
  0x18   :  { %v158_v18 = vand.u32 4294901760, %v157_v15  ;;  %v164_v22 = vsub.f32 %v44_v5, %v65_v9  ;;  %v171_v23 = vsub.f32 %v45_v6, %v68_v10  ;;  %s833_s27 = scalar_lea.vmem %s607_s1, 256  ;;  %p838_p9 = scmp.lt.s32.totalorder %s607_s1, %s607_s1 }
  0x19   :  { %34 = vperm.xlu0 %810, %v27_v7   ;;  %771 = vmatprep.subr.bf16.mxu0 %v901_v11  ;;  %v151_v17 = vand.u32 4294901760, %v150_v14  ;;  %v762_v36 = vpack.c.bf16 %v157_v15, %v150_v14  ;;  %v178_v51 = vsub.f32 %v56_v16, %v911_v19  ;;  %p834_p8 = scmp.ne.s32.totalorder %s607_s1, %s833_s27  ;;  %p839_p10 = scmp.lt.s32.totalorder %s833_s27, %s833_s27 }
  0x1a   :  { %747 = vmatprep.subr.bf16.mxu1 %v901_v11  ;;  %773 = vmatpush3.bf16.msra.mxu0 %v901_v11  ;;  %v159_v21 = vsub.f32 %v157_v15, %v158_v18  ;;  %v165_v27 = vand.u32 4294901760, %v164_v22  ;;  %v172_v28 = vand.u32 4294901760, %v171_v23  ;;  %v766_v37 = vpack.c.bf16 %v171_v23, %v164_v22 }
  0x1b   :  { %749 = vmatpush3.bf16.msra.mxu1 %v901_v11  ;;  %775 = vmatprep.subr.bf16.mxu0 %v903_v12  ;;  %v152_v20 = vsub.f32 %v150_v14, %v151_v17  ;;  %v778_v24 = vpack.c.bf16 %v158_v18, %v151_v17  ;;  %v179_v55 = vand.u32 4294901760, %v178_v51  ;;  %p840_p11 = por %p839_p10, %p838_p9 }
  0x1c   :  { %751 = vmatprep.subr.bf16.mxu1 %v903_v12  ;;  %v160_v26 = vand.u32 4294901760, %v159_v21  ;;  %v782_v30 = vpack.c.bf16 %v172_v28, %v165_v27  ;;  %v166_v31 = vsub.f32 %v164_v22, %v165_v27  ;;  %v173_v32 = vsub.f32 %v171_v23, %v172_v28 }
  0x1d   :  { %v153_v25 = vand.u32 4294901760, %v152_v20  ;;  %v180_v57 = vsub.f32 %v178_v51, %v179_v55  ;;  %p841_p12 = pnand %p840_p11, %p834_p8 }
  0x1e   :  { %777 = vmatpush3.bf16.msra.mxu0 %v903_v12  ;;  %v167_v33 = vand.u32 4294901760, %v166_v31  ;;  %v174_v34 = vand.u32 4294901760, %v173_v32 }
  0x1f   :  { %753 = vmatpush3.bf16.msra.mxu1 %v903_v12  ;;  %715 = vmatprep.subr.mxu0 %v911_v19  ;;  %v754_v29 = vpack.c.bf16 %v160_v26, %v153_v25  ;;  %v181_v58 = vand.u32 4294901760, %v180_v57 }
  0x20   :  { %676 = vmatprep.subr.mxu1 %v911_v19  ;;  %v758_v35 = vpack.c.bf16 %v174_v34, %v167_v33 }
  0x22   :  { %716 = vmatpush3.msra.mxu0 %v911_v19 }
  0x23   :  { %677 = vmatpush3.msra.mxu1 %v911_v19  ;;  %779 = vmatprep.subr.bf16.mxu0 %v778_v24 }
  0x24   :  { %755 = vmatprep.subr.bf16.mxu1 %v754_v29 }
  0x94   :  { %v32_v40 = vpop.permute.xlu0 %31 }
  0x95   :  { %vm36_vm2 = vcmp.eq.s32.totalorder %v32_v40, %v29_v39 }
  0x96   :  { %v618_v42 = vsel %vm36_vm2, 1.0, %v863_v41 }
  0x97   :  { %v49_v43 = vsel %vm47_vm1, %v618_v42, 0 }
  0x98   :  { %v129_v44 = vsub.f32 %v49_v43, %v49_v43  ;;  %v35_v45 = vpop.permute.xlu0 %34 }
  0x99   :  { %vm37_vm3 = vcmp.eq.s32.totalorder %v35_v45, %v29_v39 }
  0x9a   :  { %v619_v46 = vsel %vm37_vm3, 1.0, %v863_v41  ;;  %v130_v47 = vand.u32 4294901760, %v129_v44 }
  0x9b   :  { %v52_v48 = vsel %vm47_vm1, %v619_v46, 0 }
  0x9c   :  { %v139_v49 = vsub.f32 %v52_v48, %v52_v48  ;;  %717 = vmatprep.mubr.f32.mxu0 %v130_v47  ;;  %v131_v50 = vsub.f32 %v129_v44, %v130_v47 }
  0x9e   :  { %v132_v52 = vand.u32 4294901760, %v131_v50  ;;  %v140_v53 = vand.u32 4294901760, %v139_v49 }
  0xa0   :  { %678 = vmatprep.mubr.f32.mxu1 %v132_v52  ;;  %718 = vmatmul.mubr.f32.vlgmr.msra.gmra.mrb[0].mxu0 %v140_v53  ;;  %v141_v54 = vsub.f32 %v139_v49, %v140_v53 }
  0xa1   :  { %781 = vmatpush3.bf16.msra.mxu0 %v778_v24  ;;  %730 = vmatprep.mubr.msk.f32.mxu0 %vm47_vm1, %v618_v42 }
  0xa2   :  { %783 = vmatprep.subr.bf16.mxu0 %v782_v30  ;;  %v142_v56 = vand.u32 4294901760, %v141_v54 }
  0xa4   :  { %679 = vmatmul.mubr.f32.vlgmr.msra.gmra.mrb[0].mxu1 %v142_v56 }
  0xa5   :  { %757 = vmatpush3.bf16.msra.mxu1 %v754_v29  ;;  %785 = vmatpush3.bf16.msra.mxu0 %v782_v30 }
  0xa6   :  { %691 = vmatprep.mubr.msk.f32.mxu1 %vm47_vm1, %v618_v42  ;;  %759 = vmatprep.subr.bf16.mxu1 %v758_v35 }
  0xa7   :  { %728 = vmatprep.subr.mxu0 %v179_v55 }
  0xa9   :  { %761 = vmatpush3.bf16.msra.mxu1 %v758_v35  ;;  %729 = vmatpush3.msra.mxu0 %v179_v55 }
  0xaa   :  { %731 = vmatmul.mubr.msk.f32.vlgmr.msra.gmra.mrb[0].mxu0 %vm47_vm1, %v619_v46  ;;  %787 = vmatprep.subr.bf16.mxu0 %v901_v11 }
  0xab   :  { %789 = vmatpush3.bf16.msra.mxu0 %v901_v11  ;;  %743 = vmatprep.mubr.msk.f32.mxu0 %vm47_vm1, %v618_v42 }
  0xac   :  { %689 = vmatprep.subr.mxu1 %v181_v58  ;;  %791 = vmatprep.subr.bf16.mxu0 %v903_v12 }
  0xad   :  { %690 = vmatpush3.msra.mxu1 %v181_v58 }
  0xae   :  { %692 = vmatmul.mubr.msk.f32.vlgmr.msra.gmra.mrb[0].mxu1 %vm47_vm1, %v619_v46  ;;  %763 = vmatprep.subr.bf16.mxu1 %v762_v36 }
  0xaf   :  { %765 = vmatpush3.bf16.msra.mxu1 %v762_v36  ;;  %704 = vmatprep.mubr.f32.mxu1 %v129_v44 }
  0xb0   :  { %793 = vmatpush3.bf16.msra.mxu0 %v903_v12  ;;  %767 = vmatprep.subr.bf16.mxu1 %v766_v37 }
  0xb1   :  { %741 = vmatprep.subr.mxu0 %v911_v19 }
  0xb3   :  { %769 = vmatpush3.bf16.msra.mxu1 %v766_v37 }
  0xb4   :  { %742 = vmatpush3.msra.mxu0 %v911_v19  ;;  %702 = vmatprep.subr.mxu1 %v178_v51 }
  0xb5   :  { %744 = vmatmul.mubr.msk.f32.vlgmr.msra.gmra.mrb[0].mxu0 %vm47_vm1, %v619_v46 }
  0xb7   :  { %703 = vmatpush3.msra.mxu1 %v178_v51 }
  0xb8   :  { %705 = vmatmul.mubr.f32.vlgmr.msra.gmra.mrb[0].mxu1 %v139_v49 }
 0x188   :  { %v745_v59 = vpop.f32.mrb[0].mxu0 }
 0x189   :  { %v589_v60 = vpop.f32.mrb[1].mxu0 }
 0x18b   :  { %v706_v61 = vpop.f32.mrb[0].mxu1 }
 0x18c   :  { %v794_v62 = vadd.f32 %v745_v59, %v706_v61  ;;  %v328_v63 = vpop.f32.mrb[1].mxu1 }
 0x18d   :  { %v795_v0 = vadd.f32 %v589_v60, %v328_v63 }
 0x18e   :  { %600 = vst [vmem:[#allocation5 + $0x8] sm:$0xff] %v794_v62 }
 0x18f   :  { %599 = vst [vmem:[#allocation5] sm:$0xff] %v795_v0 }
 0x190   :  { %844 = shalt.err (!%p841_p12)
}
 0x191   :  { %s845_s30 = scalar_lea.hbm %s951_s2, 256 }
 0x192   :  { %p846_p13 = scmp.ne.s32.totalorder %s951_s2, %s845_s30  ;;  %p849_p0 = scmp.lt.u32.totalorder %s845_s30, %s951_s2 }
 0x194   :  { %p851_p1 = pnand %p849_p0, %p846_p13 }
 0x196   :  { %854 = shalt.err (!%p851_p1)
}
 0x197   :  { %612 = dma.vmem_to_hbm [thread:$0]  %s607_s1, 256, %s951_s2, [#allocation4], %s860_s19, %s860_s19, %s861_s20  }
 0x198   :  { %857 = dma.done.wait [#allocation4], 256  }
 0x199   :  { %858 = vsyncadd [#allocation4], 4294967040 }
 0x19a   :  { %616 = vsyncpa [#allocation3], 1 }
 0x19b   :  { %617 = vsyncpa [#allocation4], 1 }

</bundles_post_ra>
